<compile_context>
chip_gen: v5e
topology: v5e:2x2
jax: 0.10.0
libtpu: 0.0.40
codegen_flags: <defaults>
</compile_context>

<pallas_src>
import math

import jax
import jax.numpy as jnp
from jax.experimental import pallas as pl
from jax.experimental.pallas import tpu as pltpu

KSIZE = 5
STRIDE = 2
ALPHA = 16.0
TILE_M = 512                       # modest tile: safe for v5e, fits v7x VMEM
VMEM_LIMIT = 32 * 1024 * 1024      # explicit scoped-VMEM budget

CHANNELS = [(1, 32), (32, 64), (64, 128), (128, 256)]   # (Cin, Cout) per conv


def _round_up(x, m):
    return ((x + m - 1) // m) * m


def _full_spec(shape):
    """Single full-array block (grid=(1,))."""
    n = len(shape)
    return pl.BlockSpec(shape, lambda i, _n=n: (0,) * _n)


# ---------------------------------------------------------------------------
# Kernel 1: tiled im2col-matmul + ELU (the conv hot path)
# ---------------------------------------------------------------------------
def _conv_matmul_elu_kernel(p_ref, w_ref, o_ref):
    # bf16 operands -> f32 accumulator on the MXU.
    acc = jnp.dot(p_ref[...], w_ref[...], preferred_element_type=jnp.float32)
    # nn.ELU(alpha=1): x if x > 0 else exp(x) - 1. Clamp the negative branch so
    # the discarded side never overflows (expm1-equivalent up to f32 rounding).
    neg = jnp.exp(jnp.minimum(acc, 0.0)) - 1.0
    o_ref[...] = jnp.where(acc > 0.0, acc, neg).astype(o_ref.dtype)


def conv5x5_elu(x_nhwc, w_mat, cin):
    """x: (N,H,W,C>=cin), w_mat: (25*cin, Cout_pad) bf16 -> (N,Ho,Wo,Cout_pad) bf16."""
    N, H, W, _ = x_nhwc.shape
    Ho = (H - KSIZE) // STRIDE + 1
    Wo = (W - KSIZE) // STRIDE + 1
    cols = []
    for kh in range(KSIZE):
        for kw in range(KSIZE):
            cols.append(
                x_nhwc[:, kh:kh + STRIDE * Ho:STRIDE,
                       kw:kw + STRIDE * Wo:STRIDE, :cin]
            )
    # (N, Ho, Wo, 25, cin) -> (N*Ho*Wo, 25*cin); flat index = (kh*5+kw)*cin + c
    patches = jnp.stack(cols, axis=3).reshape(
        N * Ho * Wo, KSIZE * KSIZE * cin).astype(jnp.bfloat16)

    M, K = patches.shape
    cout_p = w_mat.shape[1]                       # already a multiple of 128

    tile_m = min(TILE_M, _round_up(M, 16))        # bf16 sublane tile = 16
    m_pad = _round_up(M, tile_m)
    if m_pad != M:
        # Zero rows -> acc = 0 -> ELU(0) = 0; sliced off below.
        patches = jnp.pad(patches, ((0, m_pad - M), (0, 0)))

    out = pl.pallas_call(
        _conv_matmul_elu_kernel,
        grid=(m_pad // tile_m,),
        in_specs=[
            pl.BlockSpec((tile_m, K), lambda i: (i, 0)),      # streamed M tiles
            pl.BlockSpec((K, cout_p), lambda i: (0, 0)),      # resident weights
        ],
        out_specs=pl.BlockSpec((tile_m, cout_p), lambda i: (i, 0)),
        out_shape=jax.ShapeDtypeStruct((m_pad, cout_p), jnp.bfloat16),
        compiler_params=pltpu.CompilerParams(
            dimension_semantics=("parallel",),
            vmem_limit_bytes=VMEM_LIMIT,
        ),
    )(patches, w_mat)
    return out[:M].reshape(N, Ho, Wo, cout_p)


# ---------------------------------------------------------------------------
# Kernel 2: AvgPool over height + L2-normalize over batch dim + FC
# ---------------------------------------------------------------------------
def _head_kernel(f_ref, wfc_ref, bfc_ref, emb_ref, logit_ref):
    f = f_ref[...].astype(jnp.float32)                 # (N, H4, C)
    pooled = jnp.mean(f, axis=1)                       # AvgPool2d((H4,1)) -> (N, C)
    # torch.div(out, torch.norm(out, p=2, dim=0)) * 16  (norm over the BATCH dim)
    sumsq = jnp.sum(pooled * pooled, axis=0, keepdims=True)        # (1, C)
    emb = pooled * jax.lax.rsqrt(sumsq + 1e-12) * ALPHA            # eps guard
    emb_ref[...] = emb
    logit_ref[...] = (
        jnp.dot(emb, wfc_ref[...], preferred_element_type=jnp.float32)
        + bfc_ref[...]
    )


def head(feat_nhc, wfc, bfc):
    N, H, C = feat_nhc.shape
    NC = wfc.shape[1]
    emb, logits = pl.pallas_call(
        _head_kernel,
        grid=(1,),
        in_specs=[_full_spec((N, H, C)), _full_spec((C, NC)), _full_spec((1, NC))],
        out_specs=(_full_spec((N, C)), _full_spec((N, NC))),
        out_shape=(
            jax.ShapeDtypeStruct((N, C), jnp.float32),
            jax.ShapeDtypeStruct((N, NC), jnp.float32),
        ),
    )(feat_nhc, wfc, bfc)
    return emb, logits


# ---------------------------------------------------------------------------
# Parameter init (deterministic, matches module __init__ shapes & init scheme)
# ---------------------------------------------------------------------------
def init_params(key, num_classes):
    keys = jax.random.split(key, 6)
    params = {}
    for i, (cin, cout) in enumerate(CHANNELS):
        # kaiming_normal_(mode='fan_out', nonlinearity='relu'), bias=False
        fan_out = cout * KSIZE * KSIZE
        std = math.sqrt(2.0 / fan_out)
        w = jax.random.normal(keys[i], (cout, cin, KSIZE, KSIZE), jnp.float32) * std
        # (Cout,Cin,kh,kw) -> (kh,kw,Cin,Cout) -> (25*Cin, Cout)  (im2col order)
        wm = jnp.transpose(w, (2, 3, 1, 0)).reshape(KSIZE * KSIZE * cin, cout)
        cout_p = _round_up(cout, 128)              # lane-dense output columns
        if cout_p != cout:
            wm = jnp.pad(wm, ((0, 0), (0, cout_p - cout)))
        params[f"conv{i + 1}"] = wm.astype(jnp.bfloat16)
    bound = 1.0 / math.sqrt(256.0)                 # nn.Linear default init
    params["fc_w"] = jax.random.uniform(
        keys[4], (256, num_classes), jnp.float32, -bound, bound
    )
    params["fc_b"] = jax.random.uniform(
        keys[5], (1, num_classes), jnp.float32, -bound, bound
    )
    return params


# ---------------------------------------------------------------------------
# Forward pass
# ---------------------------------------------------------------------------
def resnet_forward(params, x_nchw, classify=True):
    # TODO(synk): the residual block class `block` is not defined in the
    # reference module; res1..res4 are built with layers=[0,0,0,0] (empty
    # nn.Sequential == identity), so they are omitted here.
    x = jnp.transpose(x_nchw, (0, 2, 3, 1)).astype(jnp.float32)  # NCHW -> NHWC
    for i, (cin, _cout) in enumerate(CHANNELS):
        x = conv5x5_elu(x, params[f"conv{i + 1}"], cin)
    N, H4, W4, Cp = x.shape
    assert W4 == 1, "width after conv4 must be 1 (Flatten expects (n, m, 1, 1))"
    # conv4 Cout == 256 == padded width, so no channel slice is needed here.
    # TODO(synk): original AvgPool2d kernel is fixed at (309, 1); here the pool
    # spans the actual post-conv4 height (identical for the intended full-size
    # spectrogram input).
    feat = x[..., :256].reshape(N, H4, 256)
    emb, logits = head(feat, params["fc_w"], params["fc_b"])
    return logits if classify else emb


if __name__ == "__main__":
    key = jax.random.PRNGKey(0)
    pkey, xkey = jax.random.split(key)
    num_classes = 10
    params = init_params(pkey, num_classes)
    # Small input: (N=2, C=1, H=77, W=61) -> conv chain gives H=2, W=1 after conv4.
    x = jax.random.normal(xkey, (2, 1, 77, 61), jnp.float32)
    out = resnet_forward(params, x, classify=True)
    jax.block_until_ready(out)
    assert out.shape == (2, num_classes)
    assert bool(jnp.all(jnp.isfinite(out)))
    print("KERNEL_OK")
</pallas_src>

<mosaic_0001>
module attributes {stable_mosaic.version = 11 : i64} {
  func.func @_conv_matmul_elu_kernel(%arg0: i32, %arg1: memref<512x25xbf16, #tpu.memory_space<vmem>>, %arg2: memref<25x128xbf16, #tpu.memory_space<vmem>>, %arg3: memref<512x128xbf16, #tpu.memory_space<vmem>>) attributes {dimension_semantics = [#tpu.dimension_semantics<parallel>], iteration_bounds = array<i64: 5>, scalar_prefetch = 0 : i64, scratch_operands = 0 : i64, tpu.core_type = #tpu.core_type<tc>, window_params = [{transform_indices = @transform_0, window_bounds = array<i64: 512, 25>}, {pipeline_mode = #tpu.pipeline_mode<synchronous>, transform_indices = @transform_1, window_bounds = array<i64: 25, 128>}, {transform_indices = @transform_2, window_bounds = array<i64: 512, 128>}]} {
    %c0 = arith.constant 0 : index
    %c0_0 = arith.constant 0 : index
    %0 = vector.load %arg1[%c0, %c0_0] : memref<512x25xbf16, #tpu.memory_space<vmem>>, vector<512x25xbf16>
    %c0_1 = arith.constant 0 : index
    %c0_2 = arith.constant 0 : index
    %1 = vector.load %arg2[%c0_1, %c0_2] : memref<25x128xbf16, #tpu.memory_space<vmem>>, vector<25x128xbf16>
    %cst = arith.constant dense<0.000000e+00> : vector<512x128xf32>
    %2 = tpu.matmul %0, %1, %cst {dimension_numbers = #tpu.dot_dimension_numbers<[1], [0], [0], [1], [0, 0, 1, 1], [], []>} : vector<512x25xbf16>, vector<25x128xbf16>, vector<512x128xf32> -> vector<512x128xf32>
    %cst_3 = arith.constant 0.000000e+00 : f32
    %3 = vector.broadcast %cst_3 : f32 to vector<512x128xf32>
    %4 = arith.minimumf %2, %3 : vector<512x128xf32>
    %5 = math.exp %4 : vector<512x128xf32>
    %cst_4 = arith.constant 1.000000e+00 : f32
    %6 = vector.broadcast %cst_4 : f32 to vector<512x128xf32>
    %7 = arith.subf %5, %6 : vector<512x128xf32>
    %cst_5 = arith.constant 0.000000e+00 : f32
    %8 = vector.broadcast %cst_5 : f32 to vector<512x128xf32>
    %9 = arith.cmpf ogt, %2, %8 : vector<512x128xf32>
    %10 = arith.select %9, %2, %7 : vector<512x128xi1>, vector<512x128xf32>
    %11 = arith.truncf %10 : vector<512x128xf32> to vector<512x128xbf16>
    %c0_6 = arith.constant 0 : index
    %c0_7 = arith.constant 0 : index
    %12 = vector.load %arg3[%c0_6, %c0_7] : memref<512x128xbf16, #tpu.memory_space<vmem>>, vector<512x128xbf16>
    tpu.vector_store %arg3[%c0_6, %c0_7], %11 {strides = array<i32>} : memref<512x128xbf16, #tpu.memory_space<vmem>>, vector<512x128xbf16>,
    return
  }
  func.func @transform_0(%arg0: i32) -> (i32, i32) {
    %c0_i32 = arith.constant 0 : i32
    %c0_i32_0 = arith.constant 0 : i32
    return %arg0, %c0_i32 : i32, i32
  }
  func.func @transform_1(%arg0: i32) -> (i32, i32) {
    %c0_i32 = arith.constant 0 : i32
    %c0_i32_0 = arith.constant 0 : i32
    %c0_i32_1 = arith.constant 0 : i32
    return %c0_i32, %c0_i32_0 : i32, i32
  }
  func.func @transform_2(%arg0: i32) -> (i32, i32) {
    %c0_i32 = arith.constant 0 : i32
    %c0_i32_0 = arith.constant 0 : i32
    return %arg0, %c0_i32 : i32, i32
  }
}

</mosaic_0001>

<bundles_post_ra>
// kernel: tpu_custom_call.1
= control target key start
LH: loop header
LB: loop body
LE: loop exit
PB: predicated region body
PF: predicated region fallthrough
CT: control target
= control target key end

     0   :  { %7 = vsyncpa [#allocation3], 0  ;;  %s2464_s0 = inlined_call_operand.vmem [shape: bf16[2560,25], index: 0, kind: input, shape index: {}]   ;;  %s2465_s1 = inlined_call_operand.vmem [shape: bf16[25,128], index: 1, kind: input, shape index: {}]   ;;  %s2466_s2 = inlined_call_operand.hbm [shape: bf16[2560,128], index: 2, kind: output, shape index: {}]  }
   0x1   :  { %9 = vsyncpa [#allocation3 + $0x1], 0  ;;  %s1976_s9 = smov 0   ;;  %s1978_s10 = smov 0  }
   0x2   :  { %s1980_s11 = smov 0   ;;  %s1982_s12 = smov 0  }
   0x3 LB: > { %s1997_s13 = sadd.s32 4294967295, %s1956_s12   ;;  %s1248_s14 = sadd.s32 4294967294, %s1956_s12   ;;  %s1956_s12 = sphi %s1982_s12, %s2472_s12   ;;  %s1952_s11 = sphi %s1980_s11, %s2471_s11   ;;  %s1948_s10 = sphi %s1978_s10, %s2470_s10   ;;  %s1944_s9 = sphi %s1976_s9, %s2469_s9  }
   0x4   : > { %s2001_s15 = sadd.s32 1, %s1956_s12   ;;  %s69_s16 = sadd.s32 1, %s1952_s11 }
   0x5   : > { %s66_s17 = ssub.s32 %s1956_s12, %s2001_s15  ;;  %p79_p0 = scmp.ne.s32.totalorder %s1952_s11, %s1948_s10 }
   0x6   : > { %p67_p1 = scmp.eq.s32.totalorder %s66_s17, 0  ;;  %p80_p2 = scmp.eq.s32.totalorder %s1997_s13, 4 }
   0x7   : > { %p85_p3 = scmp.ne.s32.totalorder %s1948_s10, %s1944_s9  ;;  %p86_p4 = scmp.eq.s32.totalorder %s1248_s14, 4 }
   0x8   : > { %s2012_s18 = scalar_select %p67_p1, %s1952_s11, %s69_s16  }
   0x9   : > { %p2014_p5 = por %p80_p2, %p79_p0  ;;  %p2018_p6 = por %p86_p4, %p85_p3 }
   0xa   : > { %p1251_p7 = scmp.ge.s32.totalorder %s1956_s12, 1  ;;  %p116_p8 = scmp.lt.s32.totalorder %s1956_s12, 6 }
   0xc   : > { %p117_p9 = pnand %p1251_p7, %p116_p8 }
   0xd   : > { %s1253_s25 = sshll.u32 (!%p117_p9), %s1997_s13, 6  ;;  %s135_s4 = sand.u32 (!%p117_p9), 1, %s1948_s10  }
   0xe   : > { %120 = sbr.rel (%p117_p9) target bundleno = 306 (0x132), region = 28  ;;  %p139_p10 = scmp.lt.s32.totalorder (!%p117_p9), %s1253_s25, 319 }
   0xf   : > { %s2124_s5 = sshll.u32 (!%p117_p9), %s135_s4, 8  ;;  %s1526_s7 = sshll.u32 (!%p117_p9), %s1997_s13, 8 }
  0x10   : > { %s2139_s6 = scalar_lea.vmem (!%p117_p9), [#allocation2], %s2124_s5  ;;  %s1182_s14 = scalar_lea.hbm (!%p117_p9), %s2466_s2, %s1526_s7 }
  0x11   : > { %s1183_s16 = sshll.u32 (!%p117_p9), %s2139_s6, 4  ;;  %s1185_s17 = sshll.u32 (!%p117_p9), %s1182_s14, 4  ;;  %s1184_s16 = int_to_ptr.vmem [resolvable:$true] %s1183_s16  ;;  %s1186_s17 = int_to_ptr.hbm [resolvable:$true] %s1185_s17 }
  0x12   : > { %s1171_s21 = scalar_lea.sflag (!%p117_p9), [#allocation3], %s135_s4  ;;  %s1908_s22 = sshra.s32 (!%p117_p9), %s1186_s17, 4  ;;  %s1909_s22 = int_to_ptr.hbm [resolvable:$true] %s1908_s22 }
  0x13   : > { %v1389_v0 = vld [vmem:[%s2465_s1 + $0x8] sm:$0xf]  ;;  %v1525_v1 = vld [vmem:[%s2465_s1 + $0x8] sm:$0x10]  ;;  %vm482_vm0 = vcmask 1043456   ;;  %vm483_vm1 = vcmask 1044480   ;;  %p1915_p0 = scmp.lt.s32.totalorder %s1909_s22, %s2466_s2 }
  0x14   : > { %v1390_v2 = vor.u32 %v1525_v1, %v1389_v0  ;;  %v1958_v3 = vmov 65535   ;;  %s2474_s25 = smov (!%p139_p10, %s1253_s25), 319  ;;  %v1524_v7 = vld [vmem:[%s2465_s1] sm:$0xff]  ;;  %vm385_vm2 = vcmask 203776   ;;  %s1910_s23 = scalar_lea.hbm %s1909_s22, 256 }
  0x15   : > { %v484_v4 = vsel %vm482_vm0, 4294967295, %v1958_v3  ;;  %s1254_s28 = sshll.u32 %s2474_s25, 2  ;;  %p1911_p11 = scmp.ne.s32.totalorder %s1909_s22, %s1910_s23 }
  0x16   : > { %v485_v5 = vsel %vm483_vm1, %v484_v4, 0  ;;  %s2037_s3 = scalar_lea.vmem %s2464_s0, %s1254_s28  ;;  %s1914_s26 = scalar_lea.hbm %s2466_s2, 1280 }
  0x17   : > { %v487_v6 = vand.u32 %v1390_v2, %v485_v5  ;;  %v1492_v8 = vld [vmem:[%s2037_s3] sm:$0xff]  ;;  %v1493_v12 = vld [vmem:[%s2037_s3 + $0x8] sm:$0xff]  ;;  %v1494_v16 = vld [vmem:[%s2037_s3 + $0x10] sm:$0xff]  ;;  %p1912_p12 = pnand %p1911_p11, %p2014_p5  ;;  %p1916_p1 = scmp.lt.s32.totalorder %s1914_s26, %s1910_s23 }
  0x18   : > { %v1500_v9 = vld [vmem:[%s2037_s3 + $0x40] sm:$0xff]  ;;  %v1501_v13 = vld [vmem:[%s2037_s3 + $0x48] sm:$0xff]  ;;  %v1502_v17 = vld [vmem:[%s2037_s3 + $0x50] sm:$0xff] }
  0x19   : > { %495 = vmatpush.bf16.msra.mxu0 %v487_v6  ;;  %1718 = vmatpush.bf16.msra.mxu1 %v487_v6  ;;  %v1508_v10 = vld [vmem:[%s2037_s3 + $0x80] sm:$0xff]  ;;  %v1509_v14 = vld [vmem:[%s2037_s3 + $0x88] sm:$0xff]  ;;  %v1510_v18 = vld [vmem:[%s2037_s3 + $0x90] sm:$0xff]  ;;  %p1913_p13 = pneg %p1912_p12  ;;  %p1917_p2 = por %p1916_p1, %p1915_p0 }
  0x1a   : > { %1719 = vmatpush.bf16.msra.mxu2 %v487_v6  ;;  %1720 = vmatpush.bf16.msra.mxu3 %v487_v6  ;;  %v1516_v11 = vld [vmem:[%s2037_s3 + $0xc0] sm:$0xff]  ;;  %v1517_v15 = vld [vmem:[%s2037_s3 + $0xc8] sm:$0xff]  ;;  %v1518_v19 = vld [vmem:[%s2037_s3 + $0xd0] sm:$0xff] }
  0x1b   : > { %v1495_v20 = vld [vmem:[%s2037_s3 + $0x18] sm:$0xff]  ;;  %v1496_v24 = vld [vmem:[%s2037_s3 + $0x20] sm:$0xff]  ;;  %v1497_v28 = vld [vmem:[%s2037_s3 + $0x28] sm:$0xff]  ;;  %p1918_p3 = pnand %p1917_p2, %p1913_p13 }
  0x1c   : > { %v1503_v21 = vld [vmem:[%s2037_s3 + $0x58] sm:$0xff]  ;;  %v1504_v25 = vld [vmem:[%s2037_s3 + $0x60] sm:$0xff]  ;;  %v1505_v29 = vld [vmem:[%s2037_s3 + $0x68] sm:$0xff] }
  0x1d   : > { %496 = vmatpush.bf16.msra.mxu0 %v1524_v7  ;;  %1721 = vmatpush.bf16.msra.mxu1 %v1524_v7  ;;  %v1511_v22 = vld [vmem:[%s2037_s3 + $0x98] sm:$0xff]  ;;  %v1512_v26 = vld [vmem:[%s2037_s3 + $0xa0] sm:$0xff]  ;;  %v1513_v30 = vld [vmem:[%s2037_s3 + $0xa8] sm:$0xff] }
  0x1e   : > { %1722 = vmatpush.bf16.msra.mxu2 %v1524_v7  ;;  %1723 = vmatpush.bf16.msra.mxu3 %v1524_v7  ;;  %v1519_v23 = vld [vmem:[%s2037_s3 + $0xd8] sm:$0xff]  ;;  %v1520_v27 = vld [vmem:[%s2037_s3 + $0xe0] sm:$0xff]  ;;  %v1521_v31 = vld [vmem:[%s2037_s3 + $0xe8] sm:$0xff] }
  0x1f   : > { %v1498_v32 = vld [vmem:[%s2037_s3 + $0x30] sm:$0xff]  ;;  %v1499_v36 = vld [vmem:[%s2037_s3 + $0x38] sm:$0xff] }
  0x20   : > { %1391 = vmatmul.msk.bf16.vlgmr.msra.gmra.mxu0 %vm385_vm2, %v1492_v8  ;;  %1399 = vmatmul.msk.bf16.vlgmr.msra.gmra.mxu1 %vm385_vm2, %v1500_v9  ;;  %v1506_v33 = vld [vmem:[%s2037_s3 + $0x70] sm:$0xff]  ;;  %v1507_v37 = vld [vmem:[%s2037_s3 + $0x78] sm:$0xff] }
  0x21   : > { %1407 = vmatmul.msk.bf16.vlgmr.msra.gmra.mxu2 %vm385_vm2, %v1508_v10  ;;  %1415 = vmatmul.msk.bf16.vlgmr.msra.gmra.mxu3 %vm385_vm2, %v1516_v11  ;;  %v1514_v34 = vld [vmem:[%s2037_s3 + $0xb0] sm:$0xff]  ;;  %v1515_v38 = vld [vmem:[%s2037_s3 + $0xb8] sm:$0xff] }
  0x22   : > { %v1522_v35 = vld [vmem:[%s2037_s3 + $0xf0] sm:$0xff]  ;;  %v1523_v39 = vld [vmem:[%s2037_s3 + $0xf8] sm:$0xff] }
  0x30   : > { %1392 = vmatmul.msk.bf16.gmra.mxu0 %vm385_vm2, %v1493_v12  ;;  %1400 = vmatmul.msk.bf16.gmra.mxu1 %vm385_vm2, %v1501_v13 }
  0x31   : > { %1408 = vmatmul.msk.bf16.gmra.mxu2 %vm385_vm2, %v1509_v14  ;;  %1416 = vmatmul.msk.bf16.gmra.mxu3 %vm385_vm2, %v1517_v15 }
  0x40   : > { %1393 = vmatmul.msk.bf16.gmra.mxu0 %vm385_vm2, %v1494_v16  ;;  %1401 = vmatmul.msk.bf16.gmra.mxu1 %vm385_vm2, %v1502_v17 }
  0x41   : > { %1409 = vmatmul.msk.bf16.gmra.mxu2 %vm385_vm2, %v1510_v18  ;;  %1417 = vmatmul.msk.bf16.gmra.mxu3 %vm385_vm2, %v1518_v19 }
  0x50   : > { %1394 = vmatmul.msk.bf16.gmra.mxu0 %vm385_vm2, %v1495_v20  ;;  %1402 = vmatmul.msk.bf16.gmra.mxu1 %vm385_vm2, %v1503_v21 }
  0x51   : > { %1410 = vmatmul.msk.bf16.gmra.mxu2 %vm385_vm2, %v1511_v22  ;;  %1418 = vmatmul.msk.bf16.gmra.mxu3 %vm385_vm2, %v1519_v23 }
  0x60   : > { %1395 = vmatmul.msk.bf16.gmra.mxu0 %vm385_vm2, %v1496_v24  ;;  %1403 = vmatmul.msk.bf16.gmra.mxu1 %vm385_vm2, %v1504_v25 }
  0x61   : > { %1411 = vmatmul.msk.bf16.gmra.mxu2 %vm385_vm2, %v1512_v26  ;;  %1419 = vmatmul.msk.bf16.gmra.mxu3 %vm385_vm2, %v1520_v27 }
  0x70   : > { %1396 = vmatmul.msk.bf16.gmra.mxu0 %vm385_vm2, %v1497_v28  ;;  %1404 = vmatmul.msk.bf16.gmra.mxu1 %vm385_vm2, %v1505_v29 }
  0x71   : > { %1412 = vmatmul.msk.bf16.gmra.mxu2 %vm385_vm2, %v1513_v30  ;;  %1420 = vmatmul.msk.bf16.gmra.mxu3 %vm385_vm2, %v1521_v31 }
  0x80   : > { %1397 = vmatmul.msk.bf16.gmra.mxu0 %vm385_vm2, %v1498_v32  ;;  %1405 = vmatmul.msk.bf16.gmra.mxu1 %vm385_vm2, %v1506_v33 }
  0x81   : > { %1413 = vmatmul.msk.bf16.gmra.mxu2 %vm385_vm2, %v1514_v34  ;;  %1421 = vmatmul.msk.bf16.gmra.mxu3 %vm385_vm2, %v1522_v35 }
  0x90   : > { %1398 = vmatmul.msk.bf16.gmra.mxu0 %vm385_vm2, %v1499_v36  ;;  %1406 = vmatmul.msk.bf16.gmra.mxu1 %vm385_vm2, %v1507_v37 }
  0x91   : > { %1414 = vmatmul.msk.bf16.gmra.mxu2 %vm385_vm2, %v1515_v38  ;;  %1422 = vmatmul.msk.bf16.gmra.mxu3 %vm385_vm2, %v1523_v39 }
  0x9d   : > { %v498_v40 = vpop.f32.mrf.mxu0  ;;  %v538_v41 = vpop.f32.mrf.mxu1 }
  0x9e   : > { %v658_v42 = vmin.f32 %v498_v40, 0.0  ;;  %v674_v43 = vmin.f32 %v538_v41, 0.0  ;;  %vm914_vm3 = vcmp.gt.f32.partialorder %v498_v40, 0.0  ;;  %vm930_vm4 = vcmp.gt.f32.partialorder %v538_v41, 0.0 }
  0xa0   : > { %v722_v44 = vmul.f32 1.442695, %v658_v42  ;;  %v754_v45 = vmul.f32 1.442695, %v674_v43 }
  0xa2   : > { %1766 = vpow2.f32 %v722_v44 }
  0xa3   : > { %1768 = vpow2.f32 %v754_v45 }
  0xa4   : > { %v2103_v46 = vpop.f32.mrf.mxu2  ;;  %v2105_v47 = vpop.f32.mrf.mxu3 }
  0xa5   : > { %v690_v48 = vmin.f32 %v2103_v46, 0.0  ;;  %v500_v49 = vpop.f32.mrf.mxu0  ;;  %v540_v50 = vpop.f32.mrf.mxu1  ;;  %v706_v51 = vmin.f32 %v2105_v47, 0.0  ;;  %vm946_vm7 = vcmp.gt.f32.partialorder %v2103_v46, 0.0  ;;  %vm962_vm8 = vcmp.gt.f32.partialorder %v2105_v47, 0.0 }
  0xa6   : > { %v659_v52 = vmin.f32 %v500_v49, 0.0  ;;  %v675_v53 = vmin.f32 %v540_v50, 0.0  ;;  %vm915_vm5 = vcmp.gt.f32.partialorder %v500_v49, 0.0  ;;  %vm931_vm6 = vcmp.gt.f32.partialorder %v540_v50, 0.0 }
  0xa7   : > { %v786_v56 = vmul.f32 1.442695, %v690_v48  ;;  %v818_v57 = vmul.f32 1.442695, %v706_v51 }
  0xa8   : > { %v724_v54 = vmul.f32 1.442695, %v659_v52  ;;  %v756_v55 = vmul.f32 1.442695, %v675_v53  ;;  %v1767_v60 = vpop.eup %1766 }
  0xa9   : > { %v1769_v1 = vpop.eup %1768  ;;  %v1423_v5 = vadd.f32 -1.0, %v1767_v60 }
  0xaa   : > { %1770 = vpow2.f32 %v724_v54  ;;  %v1439_v8 = vadd.f32 -1.0, %v1769_v1 }
  0xab   : > { %1772 = vpow2.f32 %v756_v55  ;;  %v978_v15 = vsel %vm914_vm3, %v498_v40, %v1423_v5 }
  0xac   : > { %v2109_v58 = vpop.f32.mrf.mxu2  ;;  %v2111_v59 = vpop.f32.mrf.mxu3  ;;  %1774 = vpow2.f32 %v786_v56  ;;  %v994_v20 = vsel %vm930_vm4, %v538_v41, %v1439_v8 }
  0xad   : > { %v691_v61 = vmin.f32 %v2109_v58, 0.0  ;;  %v707_v62 = vmin.f32 %v2111_v59, 0.0  ;;  %v2115_v63 = vpop.f32.mrf.mxu0  ;;  %v2117_v0 = vpop.f32.mrf.mxu1  ;;  %1776 = vpow2.f32 %v818_v57  ;;  %vm947_vm9 = vcmp.gt.f32.partialorder %v2109_v58, 0.0 }
  0xae   : > { %v660_v4 = vmin.f32 %v2115_v63, 0.0  ;;  %v676_v6 = vmin.f32 %v2117_v0, 0.0  ;;  %vm963_vm10 = vcmp.gt.f32.partialorder %v2111_v59, 0.0  ;;  %vm916_vm11 = vcmp.gt.f32.partialorder %v2115_v63, 0.0 }
  0xaf   : > { %v788_v2 = vmul.f32 1.442695, %v691_v61  ;;  %v820_v3 = vmul.f32 1.442695, %v707_v62  ;;  %vm932_vm12 = vcmp.gt.f32.partialorder %v2117_v0, 0.0 }
  0xb0   : > { %v1771_v7 = vpop.eup %1770  ;;  %v726_v13 = vmul.f32 1.442695, %v660_v4  ;;  %v758_v17 = vmul.f32 1.442695, %v676_v6 }
  0xb1   : > { %1778 = vpow2.f32 %v788_v2  ;;  %v1773_v9 = vpop.eup %1772  ;;  %v1424_v10 = vadd.f32 -1.0, %v1771_v7 }
  0xb2   : > { %1780 = vpow2.f32 %v820_v3  ;;  %v1775_v11 = vpop.eup %1774  ;;  %v1440_v12 = vadd.f32 -1.0, %v1773_v9 }
  0xb3   : > { %v1777_v14 = vpop.eup %1776  ;;  %v979_v16 = vsel %vm915_vm5, %v500_v49, %v1424_v10  ;;  %v1455_v26 = vadd.f32 -1.0, %v1775_v11  ;;  %1782 = vpow2.f32 %v726_v13 }
  0xb4   : > { %v2126_v18 = vpop.f32.mrf.mxu2  ;;  %v2128_v19 = vpop.f32.mrf.mxu3  ;;  %v1530_v21 = vpack.c.bf16 %v979_v16, %v978_v15  ;;  %v995_v22 = vsel %vm931_vm6, %v540_v50, %v1440_v12  ;;  %v1471_v31 = vadd.f32 -1.0, %v1777_v14  ;;  %1784 = vpow2.f32 %v758_v17 }
  0xb5   : > { %v692_v23 = vmin.f32 %v2126_v18, 0.0  ;;  %v2131_v24 = vpop.f32.mrf.mxu0  ;;  %v2133_v25 = vpop.f32.mrf.mxu1  ;;  %v1570_v27 = vpack.c.bf16 %v995_v22, %v994_v20  ;;  %v708_v28 = vmin.f32 %v2128_v19, 0.0  ;;  %v1010_v39 = vsel %vm946_vm7, %v2103_v46, %v1455_v26 }
  0xb6   : > { %v661_v29 = vmin.f32 %v2131_v24, 0.0  ;;  %1531 = vst [vmem:[%s2139_s6] sm:$0xff] %v1530_v21   ;;  %v677_v32 = vmin.f32 %v2133_v25, 0.0  ;;  %v1026_v42 = vsel %vm962_vm8, %v2105_v47, %v1471_v31  ;;  %vm917_vm13 = vcmp.gt.f32.partialorder %v2131_v24, 0.0 }
  0xb7   : > { %v1779_v30 = vpop.eup %1778  ;;  %1694 = vst [vmem:[%s2139_s6 + $0x40] sm:$0xff] %v1570_v27   ;;  %v790_v37 = vmul.f32 1.442695, %v692_v23  ;;  %v822_v41 = vmul.f32 1.442695, %v708_v28  ;;  %vm933_vm14 = vcmp.gt.f32.partialorder %v2133_v25, 0.0 }
  0xb8   : > { %v1781_v33 = vpop.eup %1780  ;;  %v1456_v34 = vadd.f32 -1.0, %v1779_v30  ;;  %v728_v35 = vmul.f32 1.442695, %v661_v29  ;;  %v760_v38 = vmul.f32 1.442695, %v677_v32  ;;  %vm948_vm15 = vcmp.gt.f32.partialorder %v2126_v18, 0.0 }
  0xb9   : > { %v1472_v36 = vadd.f32 -1.0, %v1781_v33  ;;  %v1783_v50 = vpop.eup %1782  ;;  %vm964_vm0 = vcmp.gt.f32.partialorder %v2128_v19, 0.0 }
  0xba   : > { %v1011_v40 = vsel %vm947_vm9, %v2109_v58, %v1456_v34  ;;  %1786 = vpow2.f32 %v728_v35  ;;  %v1785_v53 = vpop.eup %1784  ;;  %v1425_v57 = vadd.f32 -1.0, %v1783_v50 }
  0xbb   : > { %v1610_v43 = vpack.c.bf16 %v1011_v40, %v1010_v39  ;;  %v1027_v44 = vsel %vm963_vm10, %v2111_v59, %v1472_v36  ;;  %1788 = vpow2.f32 %v760_v38  ;;  %v1441_v60 = vadd.f32 -1.0, %v1785_v53 }
  0xbc   : > { %v1650_v45 = vpack.c.bf16 %v1027_v44, %v1026_v42  ;;  %v2153_v48 = vpop.f32.mrf.mxu2  ;;  %v2155_v49 = vpop.f32.mrf.mxu3  ;;  %1790 = vpow2.f32 %v790_v37  ;;  %v980_v5 = vsel %vm916_vm11, %v2115_v63, %v1425_v57 }
  0xbd   : > { %1702 = vst [vmem:[%s2139_s6 + $0x80] sm:$0xff] %v1610_v43   ;;  %v693_v46 = vmin.f32 %v2153_v48, 0.0  ;;  %v709_v51 = vmin.f32 %v2155_v49, 0.0  ;;  %v2160_v52 = vpop.f32.mrf.mxu0  ;;  %v2162_v47 = vpop.f32.mrf.mxu1  ;;  %1792 = vpow2.f32 %v822_v41  ;;  %v996_v10 = vsel %vm932_vm12, %v2117_v0, %v1441_v60 }
  0xbe   : > { %1710 = vst [vmem:[%s2139_s6 + $0xc0] sm:$0xff] %v1650_v45   ;;  %v662_v56 = vmin.f32 %v2160_v52, 0.0  ;;  %v678_v58 = vmin.f32 %v2162_v47, 0.0  ;;  %vm949_vm1 = vcmp.gt.f32.partialorder %v2153_v48, 0.0  ;;  %vm965_vm2 = vcmp.gt.f32.partialorder %v2155_v49, 0.0 }
  0xbf   : > { %v792_v54 = vmul.f32 1.442695, %v693_v46  ;;  %v824_v55 = vmul.f32 1.442695, %v709_v51  ;;  %vm918_vm3 = vcmp.gt.f32.partialorder %v2160_v52, 0.0  ;;  %vm934_vm4 = vcmp.gt.f32.partialorder %v2162_v47, 0.0 }
  0xc0   : > { %v1787_v59 = vpop.eup %1786  ;;  %v730_v3 = vmul.f32 1.442695, %v662_v56  ;;  %v762_v7 = vmul.f32 1.442695, %v678_v58 }
  0xc1   : > { %1794 = vpow2.f32 %v792_v54  ;;  %v1789_v61 = vpop.eup %1788  ;;  %v1426_v62 = vadd.f32 -1.0, %v1787_v59 }
  0xc2   : > { %1796 = vpow2.f32 %v824_v55  ;;  %v1791_v1 = vpop.eup %1790  ;;  %v1442_v2 = vadd.f32 -1.0, %v1789_v61 }
  0xc3   : > { %v1793_v4 = vpop.eup %1792  ;;  %v981_v6 = vsel %vm917_vm13, %v2131_v24, %v1426_v62  ;;  %v1457_v15 = vadd.f32 -1.0, %v1791_v1  ;;  %1798 = vpow2.f32 %v730_v3 }
  0xc4   : > { %v2173_v8 = vpop.f32.mrf.mxu2  ;;  %v2175_v9 = vpop.f32.mrf.mxu3  ;;  %v1535_v11 = vpack.c.bf16 %v981_v6, %v980_v5  ;;  %v997_v12 = vsel %vm933_vm14, %v2133_v25, %v1442_v2  ;;  %v1473_v0 = vadd.f32 -1.0, %v1793_v4  ;;  %1800 = vpow2.f32 %v762_v7 }
  0xc5   : > { %v694_v13 = vmin.f32 %v2173_v8, 0.0  ;;  %v2180_v14 = vpop.f32.mrf.mxu0  ;;  %v2182_v63 = vpop.f32.mrf.mxu1  ;;  %v1575_v16 = vpack.c.bf16 %v997_v12, %v996_v10  ;;  %v710_v17 = vmin.f32 %v2175_v9, 0.0  ;;  %v1012_v29 = vsel %vm948_vm15, %v2126_v18, %v1457_v15 }
  0xc6   : > { %v663_v20 = vmin.f32 %v2180_v14, 0.0  ;;  %1687 = vst [vmem:[%s2139_s6 + $0x8] sm:$0xff] %v1535_v11   ;;  %v679_v22 = vmin.f32 %v2182_v63, 0.0  ;;  %v1028_v32 = vsel %vm964_vm0, %v2128_v19, %v1473_v0  ;;  %vm919_vm5 = vcmp.gt.f32.partialorder %v2180_v14, 0.0 }
  0xc7   : > { %v1795_v21 = vpop.eup %1794  ;;  %1695 = vst [vmem:[%s2139_s6 + $0x48] sm:$0xff] %v1575_v16   ;;  %v794_v27 = vmul.f32 1.442695, %v694_v13  ;;  %v826_v31 = vmul.f32 1.442695, %v710_v17  ;;  %vm935_vm6 = vcmp.gt.f32.partialorder %v2182_v63, 0.0 }
  0xc8   : > { %v1797_v23 = vpop.eup %1796  ;;  %v1458_v24 = vadd.f32 -1.0, %v1795_v21  ;;  %v732_v25 = vmul.f32 1.442695, %v663_v20  ;;  %v764_v28 = vmul.f32 1.442695, %v679_v22  ;;  %vm950_vm7 = vcmp.gt.f32.partialorder %v2173_v8, 0.0 }
  0xc9   : > { %v1474_v26 = vadd.f32 -1.0, %v1797_v23  ;;  %v1799_v38 = vpop.eup %1798  ;;  %vm966_vm8 = vcmp.gt.f32.partialorder %v2175_v9, 0.0 }
  0xca   : > { %v1013_v30 = vsel %vm949_vm1, %v2153_v48, %v1458_v24  ;;  %1802 = vpow2.f32 %v732_v25  ;;  %v1801_v41 = vpop.eup %1800  ;;  %v1427_v45 = vadd.f32 -1.0, %v1799_v38 }
  0xcb   : > { %v1615_v33 = vpack.c.bf16 %v1013_v30, %v1012_v29  ;;  %v1029_v34 = vsel %vm965_vm2, %v2155_v49, %v1474_v26  ;;  %1804 = vpow2.f32 %v764_v28  ;;  %v1443_v50 = vadd.f32 -1.0, %v1801_v41 }
  0xcc   : > { %v1655_v35 = vpack.c.bf16 %v1029_v34, %v1028_v32  ;;  %v2197_v36 = vpop.f32.mrf.mxu2  ;;  %v2199_v37 = vpop.f32.mrf.mxu3  ;;  %1806 = vpow2.f32 %v794_v27  ;;  %v982_v57 = vsel %vm918_vm3, %v2160_v52, %v1427_v45 }
  0xcd   : > { %1703 = vst [vmem:[%s2139_s6 + $0x88] sm:$0xff] %v1615_v33   ;;  %v695_v18 = vmin.f32 %v2197_v36, 0.0  ;;  %v711_v39 = vmin.f32 %v2199_v37, 0.0  ;;  %v2204_v40 = vpop.f32.mrf.mxu0  ;;  %v2206_v19 = vpop.f32.mrf.mxu1  ;;  %1808 = vpow2.f32 %v826_v31  ;;  %v998_v62 = vsel %vm934_vm4, %v2162_v47, %v1443_v50 }
  0xce   : > { %1711 = vst [vmem:[%s2139_s6 + $0xc8] sm:$0xff] %v1655_v35   ;;  %v664_v44 = vmin.f32 %v2204_v40, 0.0  ;;  %v680_v48 = vmin.f32 %v2206_v19, 0.0  ;;  %vm951_vm9 = vcmp.gt.f32.partialorder %v2197_v36, 0.0  ;;  %vm967_vm10 = vcmp.gt.f32.partialorder %v2199_v37, 0.0 }
  0xcf   : > { %v796_v42 = vmul.f32 1.442695, %v695_v18  ;;  %v828_v43 = vmul.f32 1.442695, %v711_v39  ;;  %vm920_vm11 = vcmp.gt.f32.partialorder %v2204_v40, 0.0  ;;  %vm936_vm12 = vcmp.gt.f32.partialorder %v2206_v19, 0.0 }
  0xd0   : > { %v1803_v49 = vpop.eup %1802  ;;  %v734_v55 = vmul.f32 1.442695, %v664_v44  ;;  %v766_v59 = vmul.f32 1.442695, %v680_v48 }
  0xd1   : > { %1810 = vpow2.f32 %v796_v42  ;;  %v1805_v46 = vpop.eup %1804  ;;  %v1428_v51 = vadd.f32 -1.0, %v1803_v49 }
  0xd2   : > { %1812 = vpow2.f32 %v828_v43  ;;  %v1807_v53 = vpop.eup %1806  ;;  %v1444_v54 = vadd.f32 -1.0, %v1805_v46 }
  0xd3   : > { %v1809_v56 = vpop.eup %1808  ;;  %v983_v58 = vsel %vm919_vm5, %v2180_v14, %v1428_v51  ;;  %v1459_v5 = vadd.f32 -1.0, %v1807_v53  ;;  %1814 = vpow2.f32 %v734_v55 }
  0xd4   : > { %v2217_v60 = vpop.f32.mrf.mxu2  ;;  %v2219_v61 = vpop.f32.mrf.mxu3  ;;  %v1540_v1 = vpack.c.bf16 %v983_v58, %v982_v57  ;;  %v999_v2 = vsel %vm935_vm6, %v2182_v63, %v1444_v54  ;;  %v1475_v47 = vadd.f32 -1.0, %v1809_v56  ;;  %1816 = vpow2.f32 %v766_v59 }
  0xd5   : > { %v696_v3 = vmin.f32 %v2217_v60, 0.0  ;;  %v2224_v4 = vpop.f32.mrf.mxu0  ;;  %v2226_v52 = vpop.f32.mrf.mxu1  ;;  %v1580_v6 = vpack.c.bf16 %v999_v2, %v998_v62  ;;  %v712_v7 = vmin.f32 %v2219_v61, 0.0  ;;  %v1014_v20 = vsel %vm950_vm7, %v2173_v8, %v1459_v5 }
  0xd6   : > { %v665_v10 = vmin.f32 %v2224_v4, 0.0  ;;  %1688 = vst [vmem:[%s2139_s6 + $0x10] sm:$0xff] %v1540_v1   ;;  %v681_v12 = vmin.f32 %v2226_v52, 0.0  ;;  %v1030_v22 = vsel %vm966_vm8, %v2175_v9, %v1475_v47  ;;  %vm921_vm13 = vcmp.gt.f32.partialorder %v2224_v4, 0.0 }
  0xd7   : > { %v1811_v11 = vpop.eup %1810  ;;  %1696 = vst [vmem:[%s2139_s6 + $0x50] sm:$0xff] %v1580_v6   ;;  %v798_v16 = vmul.f32 1.442695, %v696_v3  ;;  %v830_v0 = vmul.f32 1.442695, %v712_v7  ;;  %vm937_vm14 = vcmp.gt.f32.partialorder %v2226_v52, 0.0 }
  0xd8   : > { %v1813_v13 = vpop.eup %1812  ;;  %v1460_v14 = vadd.f32 -1.0, %v1811_v11  ;;  %v736_v63 = vmul.f32 1.442695, %v665_v10  ;;  %v768_v17 = vmul.f32 1.442695, %v681_v12  ;;  %vm952_vm15 = vcmp.gt.f32.partialorder %v2217_v60, 0.0 }
  0xd9   : > { %v1476_v15 = vadd.f32 -1.0, %v1813_v13  ;;  %v1815_v28 = vpop.eup %1814  ;;  %vm968_vm0 = vcmp.gt.f32.partialorder %v2219_v61, 0.0 }
  0xda   : > { %v1015_v21 = vsel %vm951_vm9, %v2197_v36, %v1460_v14  ;;  %1818 = vpow2.f32 %v736_v63  ;;  %v1817_v31 = vpop.eup %1816  ;;  %v1429_v35 = vadd.f32 -1.0, %v1815_v28 }
  0xdb   : > { %v1620_v23 = vpack.c.bf16 %v1015_v21, %v1014_v20  ;;  %v1031_v24 = vsel %vm967_vm10, %v2199_v37, %v1476_v15  ;;  %1820 = vpow2.f32 %v768_v17  ;;  %v1445_v38 = vadd.f32 -1.0, %v1817_v31 }
  0xdc   : > { %v1660_v25 = vpack.c.bf16 %v1031_v24, %v1030_v22  ;;  %v2241_v26 = vpop.f32.mrf.mxu2  ;;  %v2243_v27 = vpop.f32.mrf.mxu3  ;;  %1822 = vpow2.f32 %v798_v16  ;;  %v984_v45 = vsel %vm920_vm11, %v2204_v40, %v1429_v35 }
  0xdd   : > { %1704 = vst [vmem:[%s2139_s6 + $0x90] sm:$0xff] %v1620_v23   ;;  %v697_v8 = vmin.f32 %v2241_v26, 0.0  ;;  %v713_v29 = vmin.f32 %v2243_v27, 0.0  ;;  %v2248_v30 = vpop.f32.mrf.mxu0  ;;  %v2250_v9 = vpop.f32.mrf.mxu1  ;;  %1824 = vpow2.f32 %v830_v0  ;;  %v1000_v51 = vsel %vm936_vm12, %v2206_v19, %v1445_v38 }
  0xde   : > { %1712 = vst [vmem:[%s2139_s6 + $0xd0] sm:$0xff] %v1660_v25   ;;  %v666_v34 = vmin.f32 %v2248_v30, 0.0  ;;  %v682_v36 = vmin.f32 %v2250_v9, 0.0  ;;  %vm953_vm1 = vcmp.gt.f32.partialorder %v2241_v26, 0.0  ;;  %vm969_vm2 = vcmp.gt.f32.partialorder %v2243_v27, 0.0 }
  0xdf   : > { %v800_v32 = vmul.f32 1.442695, %v697_v8  ;;  %v832_v33 = vmul.f32 1.442695, %v713_v29  ;;  %vm922_vm3 = vcmp.gt.f32.partialorder %v2248_v30, 0.0  ;;  %vm938_vm4 = vcmp.gt.f32.partialorder %v2250_v9, 0.0 }
  0xe0   : > { %v1819_v37 = vpop.eup %1818  ;;  %v738_v43 = vmul.f32 1.442695, %v666_v34  ;;  %v770_v49 = vmul.f32 1.442695, %v682_v36 }
  0xe1   : > { %1826 = vpow2.f32 %v800_v32  ;;  %v1821_v18 = vpop.eup %1820  ;;  %v1430_v39 = vadd.f32 -1.0, %v1819_v37 }
  0xe2   : > { %1828 = vpow2.f32 %v832_v33  ;;  %v1823_v41 = vpop.eup %1822  ;;  %v1446_v42 = vadd.f32 -1.0, %v1821_v18 }
  0xe3   : > { %v1825_v44 = vpop.eup %1824  ;;  %v985_v48 = vsel %vm921_vm13, %v2224_v4, %v1430_v39  ;;  %v1461_v57 = vadd.f32 -1.0, %v1823_v41  ;;  %1830 = vpow2.f32 %v738_v43 }
  0xe4   : > { %v2261_v50 = vpop.f32.mrf.mxu2  ;;  %v2263_v46 = vpop.f32.mrf.mxu3  ;;  %v1545_v53 = vpack.c.bf16 %v985_v48, %v984_v45  ;;  %v1001_v54 = vsel %vm937_vm14, %v2226_v52, %v1446_v42  ;;  %v1477_v19 = vadd.f32 -1.0, %v1825_v44  ;;  %1832 = vpow2.f32 %v770_v49 }
  0xe5   : > { %v698_v55 = vmin.f32 %v2261_v50, 0.0  ;;  %v2268_v56 = vpop.f32.mrf.mxu0  ;;  %v2270_v40 = vpop.f32.mrf.mxu1  ;;  %v1585_v58 = vpack.c.bf16 %v1001_v54, %v1000_v51  ;;  %v714_v59 = vmin.f32 %v2263_v46, 0.0  ;;  %v1016_v10 = vsel %vm952_vm15, %v2217_v60, %v1461_v57 }
  0xe6   : > { %v667_v62 = vmin.f32 %v2268_v56, 0.0  ;;  %1689 = vst [vmem:[%s2139_s6 + $0x18] sm:$0xff] %v1545_v53   ;;  %v683_v2 = vmin.f32 %v2270_v40, 0.0  ;;  %v1032_v12 = vsel %vm968_vm0, %v2219_v61, %v1477_v19  ;;  %vm923_vm5 = vcmp.gt.f32.partialorder %v2268_v56, 0.0 }
  0xe7   : > { %v1827_v1 = vpop.eup %1826  ;;  %1697 = vst [vmem:[%s2139_s6 + $0x58] sm:$0xff] %v1585_v58   ;;  %v802_v6 = vmul.f32 1.442695, %v698_v55  ;;  %v834_v47 = vmul.f32 1.442695, %v714_v59  ;;  %vm939_vm6 = vcmp.gt.f32.partialorder %v2270_v40, 0.0 }
  0xe8   : > { %v1829_v3 = vpop.eup %1828  ;;  %v1462_v4 = vadd.f32 -1.0, %v1827_v1  ;;  %v740_v52 = vmul.f32 1.442695, %v667_v62  ;;  %v772_v7 = vmul.f32 1.442695, %v683_v2  ;;  %vm954_vm7 = vcmp.gt.f32.partialorder %v2261_v50, 0.0 }
  0xe9   : > { %v1478_v5 = vadd.f32 -1.0, %v1829_v3  ;;  %v1831_v17 = vpop.eup %1830  ;;  %vm970_vm8 = vcmp.gt.f32.partialorder %v2263_v46, 0.0 }
  0xea   : > { %v1017_v11 = vsel %vm953_vm1, %v2241_v26, %v1462_v4  ;;  %1834 = vpow2.f32 %v740_v52  ;;  %v1833_v0 = vpop.eup %1832  ;;  %v1431_v25 = vadd.f32 -1.0, %v1831_v17 }
  0xeb   : > { %v1625_v13 = vpack.c.bf16 %v1017_v11, %v1016_v10  ;;  %v1033_v14 = vsel %vm969_vm2, %v2243_v27, %v1478_v5  ;;  %1836 = vpow2.f32 %v772_v7  ;;  %v1447_v28 = vadd.f32 -1.0, %v1833_v0 }
  0xec   : > { %v1665_v63 = vpack.c.bf16 %v1033_v14, %v1032_v12  ;;  %v2285_v15 = vpop.f32.mrf.mxu2  ;;  %v2287_v16 = vpop.f32.mrf.mxu3  ;;  %1838 = vpow2.f32 %v802_v6  ;;  %v986_v35 = vsel %vm922_vm3, %v2248_v30, %v1431_v25 }
  0xed   : > { %1705 = vst [vmem:[%s2139_s6 + $0x98] sm:$0xff] %v1625_v13   ;;  %v699_v60 = vmin.f32 %v2285_v15, 0.0  ;;  %v715_v20 = vmin.f32 %v2287_v16, 0.0  ;;  %v2292_v21 = vpop.f32.mrf.mxu0  ;;  %v2294_v61 = vpop.f32.mrf.mxu1  ;;  %1840 = vpow2.f32 %v834_v47  ;;  %v1002_v39 = vsel %vm938_vm4, %v2250_v9, %v1447_v28 }
  0xee   : > { %1713 = vst [vmem:[%s2139_s6 + $0xd8] sm:$0xff] %v1665_v63   ;;  %v668_v24 = vmin.f32 %v2292_v21, 0.0  ;;  %v684_v26 = vmin.f32 %v2294_v61, 0.0  ;;  %vm955_vm9 = vcmp.gt.f32.partialorder %v2285_v15, 0.0  ;;  %vm971_vm10 = vcmp.gt.f32.partialorder %v2287_v16, 0.0 }
  0xef   : > { %v804_v22 = vmul.f32 1.442695, %v699_v60  ;;  %v836_v23 = vmul.f32 1.442695, %v715_v20  ;;  %vm924_vm11 = vcmp.gt.f32.partialorder %v2292_v21, 0.0  ;;  %vm940_vm12 = vcmp.gt.f32.partialorder %v2294_v61, 0.0 }
  0xf0   : > { %v1835_v27 = vpop.eup %1834  ;;  %v742_v33 = vmul.f32 1.442695, %v668_v24  ;;  %v774_v37 = vmul.f32 1.442695, %v684_v26 }
  0xf1   : > { %1842 = vpow2.f32 %v804_v22  ;;  %v1837_v8 = vpop.eup %1836  ;;  %v1432_v29 = vadd.f32 -1.0, %v1835_v27 }
  0xf2   : > { %1844 = vpow2.f32 %v836_v23  ;;  %v1839_v31 = vpop.eup %1838  ;;  %v1448_v32 = vadd.f32 -1.0, %v1837_v8 }
  0xf3   : > { %v1841_v34 = vpop.eup %1840  ;;  %v987_v36 = vsel %vm923_vm5, %v2268_v56, %v1432_v29  ;;  %v1463_v45 = vadd.f32 -1.0, %v1839_v31  ;;  %1846 = vpow2.f32 %v742_v33 }
  0xf4   : > { %v2305_v38 = vpop.f32.mrf.mxu2  ;;  %v2307_v18 = vpop.f32.mrf.mxu3  ;;  %v1550_v41 = vpack.c.bf16 %v987_v36, %v986_v35  ;;  %v1003_v42 = vsel %vm939_vm6, %v2270_v40, %v1448_v32  ;;  %v1479_v9 = vadd.f32 -1.0, %v1841_v34  ;;  %1848 = vpow2.f32 %v774_v37 }
  0xf5   : > { %v700_v43 = vmin.f32 %v2305_v38, 0.0  ;;  %v2312_v44 = vpop.f32.mrf.mxu0  ;;  %v2314_v30 = vpop.f32.mrf.mxu1  ;;  %v1590_v48 = vpack.c.bf16 %v1003_v42, %v1002_v39  ;;  %v716_v49 = vmin.f32 %v2307_v18, 0.0  ;;  %v1018_v62 = vsel %vm954_vm7, %v2261_v50, %v1463_v45 }
  0xf6   : > { %v669_v51 = vmin.f32 %v2312_v44, 0.0  ;;  %1690 = vst [vmem:[%s2139_s6 + $0x20] sm:$0xff] %v1550_v41   ;;  %v685_v54 = vmin.f32 %v2314_v30, 0.0  ;;  %v1034_v2 = vsel %vm970_vm8, %v2263_v46, %v1479_v9  ;;  %vm925_vm13 = vcmp.gt.f32.partialorder %v2312_v44, 0.0 }
  0xf7   : > { %v1843_v53 = vpop.eup %1842  ;;  %1698 = vst [vmem:[%s2139_s6 + $0x60] sm:$0xff] %v1590_v48   ;;  %v806_v58 = vmul.f32 1.442695, %v700_v43  ;;  %v838_v19 = vmul.f32 1.442695, %v716_v49  ;;  %vm941_vm14 = vcmp.gt.f32.partialorder %v2314_v30, 0.0 }
  0xf8   : > { %v1845_v55 = vpop.eup %1844  ;;  %v1464_v56 = vadd.f32 -1.0, %v1843_v53  ;;  %v744_v40 = vmul.f32 1.442695, %v669_v51  ;;  %v776_v59 = vmul.f32 1.442695, %v685_v54  ;;  %vm956_vm15 = vcmp.gt.f32.partialorder %v2305_v38, 0.0 }
  0xf9   : > { %v1480_v57 = vadd.f32 -1.0, %v1845_v55  ;;  %v1847_v7 = vpop.eup %1846  ;;  %vm972_vm0 = vcmp.gt.f32.partialorder %v2307_v18, 0.0 }
  0xfa   : > { %v1019_v1 = vsel %vm955_vm9, %v2285_v15, %v1464_v56  ;;  %1850 = vpow2.f32 %v744_v40  ;;  %v1849_v47 = vpop.eup %1848  ;;  %v1433_v63 = vadd.f32 -1.0, %v1847_v7 }
  0xfb   : > { %v1630_v3 = vpack.c.bf16 %v1019_v1, %v1018_v62  ;;  %v1035_v4 = vsel %vm971_vm10, %v2287_v16, %v1480_v57  ;;  %1852 = vpow2.f32 %v776_v59  ;;  %v1449_v17 = vadd.f32 -1.0, %v1849_v47 }
  0xfc   : > { %v1670_v52 = vpack.c.bf16 %v1035_v4, %v1034_v2  ;;  %v2329_v5 = vpop.f32.mrf.mxu2  ;;  %v2331_v6 = vpop.f32.mrf.mxu3  ;;  %1854 = vpow2.f32 %v806_v58  ;;  %v988_v25 = vsel %vm924_vm11, %v2292_v21, %v1433_v63 }
  0xfd   : > { %1706 = vst [vmem:[%s2139_s6 + $0xa0] sm:$0xff] %v1630_v3   ;;  %v701_v50 = vmin.f32 %v2329_v5, 0.0  ;;  %v717_v10 = vmin.f32 %v2331_v6, 0.0  ;;  %v2336_v11 = vpop.f32.mrf.mxu0  ;;  %v2338_v46 = vpop.f32.mrf.mxu1  ;;  %1856 = vpow2.f32 %v838_v19  ;;  %v1004_v29 = vsel %vm940_vm12, %v2294_v61, %v1449_v17 }
  0xfe   : > { %1714 = vst [vmem:[%s2139_s6 + $0xe0] sm:$0xff] %v1670_v52   ;;  %v670_v14 = vmin.f32 %v2336_v11, 0.0  ;;  %v686_v15 = vmin.f32 %v2338_v46, 0.0  ;;  %vm957_vm1 = vcmp.gt.f32.partialorder %v2329_v5, 0.0  ;;  %vm973_vm2 = vcmp.gt.f32.partialorder %v2331_v6, 0.0 }
  0xff   : > { %v808_v12 = vmul.f32 1.442695, %v701_v50  ;;  %v840_v13 = vmul.f32 1.442695, %v717_v10  ;;  %vm926_vm3 = vcmp.gt.f32.partialorder %v2336_v11, 0.0  ;;  %vm942_vm4 = vcmp.gt.f32.partialorder %v2338_v46, 0.0 }
 0x100   : > { %v1851_v16 = vpop.eup %1850  ;;  %v746_v23 = vmul.f32 1.442695, %v670_v14  ;;  %v778_v27 = vmul.f32 1.442695, %v686_v15 }
 0x101   : > { %1858 = vpow2.f32 %v808_v12  ;;  %v1853_v60 = vpop.eup %1852  ;;  %v1434_v20 = vadd.f32 -1.0, %v1851_v16 }
 0x102   : > { %1860 = vpow2.f32 %v840_v13  ;;  %v1855_v0 = vpop.eup %1854  ;;  %v1450_v22 = vadd.f32 -1.0, %v1853_v60 }
 0x103   : > { %v1857_v24 = vpop.eup %1856  ;;  %v989_v26 = vsel %vm925_vm13, %v2312_v44, %v1434_v20  ;;  %v1465_v35 = vadd.f32 -1.0, %v1855_v0  ;;  %1862 = vpow2.f32 %v746_v23 }
 0x104   : > { %v2349_v28 = vpop.f32.mrf.mxu2  ;;  %v2351_v8 = vpop.f32.mrf.mxu3  ;;  %v1555_v31 = vpack.c.bf16 %v989_v26, %v988_v25  ;;  %v1005_v32 = vsel %vm941_vm14, %v2314_v30, %v1450_v22  ;;  %v1481_v61 = vadd.f32 -1.0, %v1857_v24  ;;  %1864 = vpow2.f32 %v778_v27 }
 0x105   : > { %v702_v33 = vmin.f32 %v2349_v28, 0.0  ;;  %v2356_v34 = vpop.f32.mrf.mxu0  ;;  %v2358_v21 = vpop.f32.mrf.mxu1  ;;  %v1595_v36 = vpack.c.bf16 %v1005_v32, %v1004_v29  ;;  %v718_v37 = vmin.f32 %v2351_v8, 0.0  ;;  %v1020_v51 = vsel %vm956_vm15, %v2305_v38, %v1465_v35 }
 0x106   : > { %v671_v39 = vmin.f32 %v2356_v34, 0.0  ;;  %1691 = vst [vmem:[%s2139_s6 + $0x28] sm:$0xff] %v1555_v31   ;;  %v687_v42 = vmin.f32 %v2358_v21, 0.0  ;;  %v1036_v54 = vsel %vm972_vm0, %v2307_v18, %v1481_v61  ;;  %vm927_vm5 = vcmp.gt.f32.partialorder %v2356_v34, 0.0 }
 0x107   : > { %v1859_v41 = vpop.eup %1858  ;;  %1699 = vst [vmem:[%s2139_s6 + $0x68] sm:$0xff] %v1595_v36   ;;  %v810_v48 = vmul.f32 1.442695, %v702_v33  ;;  %v842_v9 = vmul.f32 1.442695, %v718_v37  ;;  %vm943_vm6 = vcmp.gt.f32.partialorder %v2358_v21, 0.0 }
 0x108   : > { %v1861_v43 = vpop.eup %1860  ;;  %v1466_v44 = vadd.f32 -1.0, %v1859_v41  ;;  %v748_v30 = vmul.f32 1.442695, %v671_v39  ;;  %v780_v49 = vmul.f32 1.442695, %v687_v42  ;;  %vm958_vm7 = vcmp.gt.f32.partialorder %v2349_v28, 0.0 }
 0x109   : > { %v1482_v45 = vadd.f32 -1.0, %v1861_v43  ;;  %v1863_v59 = vpop.eup %1862  ;;  %vm974_vm8 = vcmp.gt.f32.partialorder %v2351_v8, 0.0 }
 0x10a   : > { %v1021_v53 = vsel %vm957_vm1, %v2329_v5, %v1466_v44  ;;  %1866 = vpow2.f32 %v748_v30  ;;  %v1865_v19 = vpop.eup %1864  ;;  %v1435_v52 = vadd.f32 -1.0, %v1863_v59 }
 0x10b   : > { %v1635_v55 = vpack.c.bf16 %v1021_v53, %v1020_v51  ;;  %v1037_v56 = vsel %vm973_vm2, %v2331_v6, %v1482_v45  ;;  %1868 = vpow2.f32 %v780_v49  ;;  %v1451_v7 = vadd.f32 -1.0, %v1865_v19 }
 0x10c   : > { %v1675_v40 = vpack.c.bf16 %v1037_v56, %v1036_v54  ;;  %v2373_v57 = vpop.f32.mrf.mxu2  ;;  %v2375_v58 = vpop.f32.mrf.mxu3  ;;  %1870 = vpow2.f32 %v810_v48  ;;  %v990_v63 = vsel %vm926_vm3, %v2336_v11, %v1435_v52 }
 0x10d   : > { %1707 = vst [vmem:[%s2139_s6 + $0xa8] sm:$0xff] %v1635_v55   ;;  %v703_v38 = vmin.f32 %v2373_v57, 0.0  ;;  %v719_v62 = vmin.f32 %v2375_v58, 0.0  ;;  %v2380_v1 = vpop.f32.mrf.mxu0  ;;  %v2382_v18 = vpop.f32.mrf.mxu1  ;;  %1872 = vpow2.f32 %v842_v9  ;;  %v1006_v20 = vsel %vm942_vm4, %v2338_v46, %v1451_v7 }
 0x10e   : > { %1715 = vst [vmem:[%s2139_s6 + $0xe8] sm:$0xff] %v1675_v40   ;;  %v672_v4 = vmin.f32 %v2380_v1, 0.0  ;;  %v688_v5 = vmin.f32 %v2382_v18, 0.0  ;;  %vm959_vm9 = vcmp.gt.f32.partialorder %v2373_v57, 0.0  ;;  %vm975_vm10 = vcmp.gt.f32.partialorder %v2375_v58, 0.0 }
 0x10f   : > { %v812_v2 = vmul.f32 1.442695, %v703_v38  ;;  %v844_v3 = vmul.f32 1.442695, %v719_v62  ;;  %vm928_vm11 = vcmp.gt.f32.partialorder %v2380_v1, 0.0  ;;  %vm944_vm13 = vcmp.gt.f32.partialorder %v2382_v18, 0.0 }
 0x110   : > { %v1867_v6 = vpop.eup %1866  ;;  %v750_v13 = vmul.f32 1.442695, %v672_v4  ;;  %v782_v16 = vmul.f32 1.442695, %v688_v5 }
 0x111   : > { %1874 = vpow2.f32 %v812_v2  ;;  %v1869_v50 = vpop.eup %1868  ;;  %v1436_v10 = vadd.f32 -1.0, %v1867_v6 }
 0x112   : > { %1876 = vpow2.f32 %v844_v3  ;;  %v1871_v47 = vpop.eup %1870  ;;  %v1452_v12 = vadd.f32 -1.0, %v1869_v50 }
 0x113   : > { %v1873_v14 = vpop.eup %1872  ;;  %v991_v15 = vsel %vm927_vm5, %v2356_v34, %v1436_v10  ;;  %v1467_v25 = vadd.f32 -1.0, %v1871_v47  ;;  %1878 = vpow2.f32 %v750_v13 }
 0x114   : > { %v2393_v17 = vpop.f32.mrf.mxu2  ;;  %v2395_v60 = vpop.f32.mrf.mxu3  ;;  %v1560_v0 = vpack.c.bf16 %v991_v15, %v990_v63  ;;  %v1007_v22 = vsel %vm943_vm6, %v2358_v21, %v1452_v12  ;;  %v1483_v32 = vadd.f32 -1.0, %v1873_v14  ;;  %1880 = vpow2.f32 %v782_v16 }
 0x115   : > { %v704_v23 = vmin.f32 %v2393_v17, 0.0  ;;  %v535_v24 = vpop.f32.mrf.mxu0  ;;  %v2400_v11 = vpop.f32.mrf.mxu1  ;;  %v1600_v26 = vpack.c.bf16 %v1007_v22, %v1006_v20  ;;  %v720_v27 = vmin.f32 %v2395_v60, 0.0  ;;  %v1022_v39 = vsel %vm958_vm7, %v2349_v28, %v1467_v25 }
 0x116   : > { %v673_v29 = vmin.f32 %v535_v24, 0.0  ;;  %1692 = vst [vmem:[%s2139_s6 + $0x30] sm:$0xff] %v1560_v0   ;;  %v689_v46 = vmin.f32 %v2400_v11, 0.0  ;;  %v1038_v42 = vsel %vm974_vm8, %v2351_v8, %v1483_v32  ;;  %vm929_vm12 = vcmp.gt.f32.partialorder %v535_v24, 0.0 }
 0x117   : > { %v1875_v31 = vpop.eup %1874  ;;  %1700 = vst [vmem:[%s2139_s6 + $0x70] sm:$0xff] %v1600_v26   ;;  %v814_v36 = vmul.f32 1.442695, %v704_v23  ;;  %v846_v61 = vmul.f32 1.442695, %v720_v27  ;;  %vm945_vm14 = vcmp.gt.f32.partialorder %v2400_v11, 0.0 }
 0x118   : > { %v1877_v33 = vpop.eup %1876  ;;  %v1468_v34 = vadd.f32 -1.0, %v1875_v31  ;;  %v752_v21 = vmul.f32 1.442695, %v673_v29  ;;  %v784_v37 = vmul.f32 1.442695, %v689_v46  ;;  %vm960_vm15 = vcmp.gt.f32.partialorder %v2393_v17, 0.0 }
 0x119   : > { %v1484_v35 = vadd.f32 -1.0, %v1877_v33  ;;  %v1879_v49 = vpop.eup %1878  ;;  %vm976_vm1 = vcmp.gt.f32.partialorder %v2395_v60, 0.0 }
 0x11a   : > { %v1023_v41 = vsel %vm959_vm9, %v2373_v57, %v1468_v34  ;;  %1882 = vpow2.f32 %v752_v21  ;;  %v1881_v53 = vpop.eup %1880  ;;  %v1437_v8 = vadd.f32 -1.0, %v1879_v49 }
 0x11b   : > { %v1640_v43 = vpack.c.bf16 %v1023_v41, %v1022_v39  ;;  %v1039_v44 = vsel %vm975_vm10, %v2375_v58, %v1484_v35  ;;  %1884 = vpow2.f32 %v784_v37  ;;  %v1453_v56 = vadd.f32 -1.0, %v1881_v53 }
 0x11c   : > { %v1680_v30 = vpack.c.bf16 %v1039_v44, %v1038_v42  ;;  %v615_v45 = vpop.f32.mrf.mxu2  ;;  %v655_v48 = vpop.f32.mrf.mxu3  ;;  %1886 = vpow2.f32 %v814_v36  ;;  %v992_v62 = vsel %vm928_vm11, %v2380_v1, %v1437_v8 }
 0x11d   : > { %1708 = vst [vmem:[%s2139_s6 + $0xb0] sm:$0xff] %v1640_v43   ;;  %v705_v28 = vmin.f32 %v615_v45, 0.0  ;;  %v721_v51 = vmin.f32 %v655_v48, 0.0  ;;  %1888 = vpow2.f32 %v846_v61  ;;  %v1008_v2 = vsel %vm944_vm13, %v2382_v18, %v1453_v56 }
 0x11e   : > { %1716 = vst [vmem:[%s2139_s6 + $0xf0] sm:$0xff] %v1680_v30   ;;  %vm961_vm0 = vcmp.gt.f32.partialorder %v615_v45, 0.0  ;;  %vm977_vm2 = vcmp.gt.f32.partialorder %v655_v48, 0.0 }
 0x11f   : > { %v816_v9 = vmul.f32 1.442695, %v705_v28  ;;  %v848_v54 = vmul.f32 1.442695, %v721_v51 }
 0x120   : > { %v1883_v55 = vpop.eup %1882 }
 0x121   : > { %1890 = vpow2.f32 %v816_v9  ;;  %v1885_v40 = vpop.eup %1884  ;;  %v1438_v57 = vadd.f32 -1.0, %v1883_v55 }
 0x122   : > { %1892 = vpow2.f32 %v848_v54  ;;  %v1887_v58 = vpop.eup %1886  ;;  %v1454_v59 = vadd.f32 -1.0, %v1885_v40 }
 0x123   : > { %v1889_v38 = vpop.eup %1888  ;;  %v993_v19 = vsel %vm929_vm12, %v535_v24, %v1438_v57  ;;  %v1469_v52 = vadd.f32 -1.0, %v1887_v58 }
 0x124   : > { %v1565_v3 = vpack.c.bf16 %v993_v19, %v992_v62  ;;  %v1009_v4 = vsel %vm945_vm14, %v2400_v11, %v1454_v59  ;;  %v1485_v7 = vadd.f32 -1.0, %v1889_v38 }
 0x125   : > { %v1605_v5 = vpack.c.bf16 %v1009_v4, %v1008_v2  ;;  %v1024_v10 = vsel %vm960_vm15, %v2393_v17, %v1469_v52 }
 0x126   : > { %1693 = vst [vmem:[%s2139_s6 + $0x38] sm:$0xff] %v1565_v3   ;;  %v1040_v12 = vsel %vm976_vm1, %v2395_v60, %v1485_v7 }
 0x127   : > { %v1891_v6 = vpop.eup %1890  ;;  %1701 = vst [vmem:[%s2139_s6 + $0x78] sm:$0xff] %v1605_v5  }
 0x128   : > { %v1893_v1 = vpop.eup %1892  ;;  %v1470_v50 = vadd.f32 -1.0, %v1891_v6 }
 0x129   : > { %v1486_v18 = vadd.f32 -1.0, %v1893_v1 }
 0x12a   : > { %v1025_v47 = vsel %vm961_vm0, %v615_v45, %v1470_v50 }
 0x12b   : > { %v1645_v13 = vpack.c.bf16 %v1025_v47, %v1024_v10  ;;  %v1041_v14 = vsel %vm977_vm2, %v655_v48, %v1486_v18 }
 0x12c   : > { %v1685_v63 = vpack.c.bf16 %v1041_v14, %v1040_v12 }
 0x12d   : > { %1709 = vst [vmem:[%s2139_s6 + $0xb8] sm:$0xff] %v1645_v13  }
 0x12e   : > { %1717 = vst [vmem:[%s2139_s6 + $0xf8] sm:$0xff] %v1685_v63  }
 0x12f   : > { %1921 = shalt.err (!%p1918_p3)
}
 0x130   : > { %s1959_s29 = smov 64   ;;  %s1960_s30 = smov 4  }
 0x131   : > { %1724 = dma.vmem_to_hbm [thread:$0]  (%p2014_p5), %s1184_s16, 4096, %s1186_s17, %s1171_s21, %s1959_s29, %s1959_s29, %s1960_s30  }
 0x132 PF: > { %p1730_p4 = scmp.ge.s32.totalorder %s1956_s12, 2  ;;  %s1200_s3 = sand.u32 1, %s1944_s9  }
 0x133   : > { %s1201_s4 = scalar_lea.sflag [#allocation3], %s1200_s3 }
 0x134   : > { %p1727_p7 = pnand %p1730_p4, %p2018_p6 }
 0x136   : > { %p1728_p8 = pneg %p1727_p7 }
 0x138   : > { %1939 = dma.done.wait (%p1728_p8), %s1201_s4, 4096  }
 0x139   : > { %1941 = vsyncadd (%p1728_p8), %s1201_s4, 4294963200  ;;  %p12_p9 = scmp.ge.s32.totalorder %s2001_s15, 7   ;;  %s2469_s9 = smov %s1948_s10 }
 0x13a   : > { %s2470_s10 = smov %s1952_s11  ;;  %s2471_s11 = smov %s2012_s18 }
 0x13b   : > { %s2472_s12 = smov %s2001_s15  ;;  %14 = sbr.rel (!%p12_p9) target bundleno = 3 (0x3), region = 63 }
 0x140   :  { %1207 = vsyncpa [#allocation3], 1 }
 0x141   :  { %1209 = vsyncpa [#allocation3 + $0x1], 1 }

</bundles_post_ra>
